<compile_context>
chip_gen: v7x
topology: tpu7x:2x2x1
jax: 0.10.0
libtpu: 0.0.40
codegen_flags: <defaults>
</compile_context>

<pallas_src>
import math

import jax
import jax.numpy as jnp
from jax.experimental import pallas as pl
from jax.experimental.pallas import tpu as pltpu

SHIFT = float(jnp.log(jnp.float32(2.0)))   # log(2), same as torch.log(tensor(2.0)).item()
THRESHOLD = 20.0                           # torch softplus default threshold
_LANE = 1024                               # lane-dense slab width (multiple of 128)
_TARGET_BLOCK_BYTES = 4 << 20              # ~4 MiB per block


def _shifted_softplus_kernel(x_ref, o_ref):
    x = x_ref[...].astype(jnp.float32)
    # Numerically-stable softplus with torch's hard threshold at 20.
    # exp() in the untaken branch may overflow to +inf but never produces NaN,
    # and the where() discards it — so no jnp.minimum clamp is needed.
    sp = jnp.where(x > THRESHOLD, x, jnp.log1p(jnp.exp(x)))
    o_ref[...] = (sp - SHIFT).astype(o_ref.dtype)


def shifted_softplus(x):
    """Elementwise softplus(x) - log(2) for an arbitrarily shaped array."""
    orig_shape = x.shape
    total = math.prod(orig_shape)
    if total == 0:
        return x
    itemsize = jnp.dtype(x.dtype).itemsize

    # Lane-dense slab: rows of _LANE elements each.
    n_rows = pl.cdiv(total, _LANE)
    # ~4 MiB blocks, sublane-aligned (multiple of 8 rows). Small inputs get a
    # single block covering the whole (padded) slab.
    max_tile_rows = max(8, (_TARGET_BLOCK_BYTES // (_LANE * itemsize)) // 8 * 8)
    tile_rows = min(max_tile_rows, pl.cdiv(n_rows, 8) * 8)

    padded_rows = pl.cdiv(n_rows, tile_rows) * tile_rows
    padded_total = padded_rows * _LANE

    flat = x.reshape(-1)
    if padded_total != total:
        flat = jnp.pad(flat, (0, padded_total - total))
    slab = flat.reshape(padded_rows, _LANE)

    grid = (padded_rows // tile_rows,)
    block_bytes = tile_rows * _LANE * itemsize
    # 2 buffers x (input tile + output tile) + headroom; stays well under the
    # 64 MiB v7x VMEM per core.
    vmem_limit = min(64 << 20, 4 * block_bytes + (4 << 20))

    out_slab = pl.pallas_call(
        _shifted_softplus_kernel,
        out_shape=jax.ShapeDtypeStruct((padded_rows, _LANE), x.dtype),
        grid_spec=pltpu.PrefetchScalarGridSpec(
            num_scalar_prefetch=0,
            grid=grid,
            in_specs=[pl.BlockSpec((tile_rows, _LANE), lambda i: (i, 0))],
            out_specs=pl.BlockSpec((tile_rows, _LANE), lambda i: (i, 0)),
        ),
        compiler_params=pltpu.CompilerParams(
            dimension_semantics=("parallel",),
            vmem_limit_bytes=vmem_limit,
        ),
        cost_estimate=pl.CostEstimate(
            flops=3 * total,
            transcendentals=2 * total,
            bytes_accessed=2 * total * itemsize,
        ),
    )(slab)

    out = out_slab.reshape(-1)
    if padded_total != total:
        out = out[:total]
    return out.reshape(orig_shape)


def shifted_softplus_ref(x):
    xf = x.astype(jnp.float32)
    sp = jnp.where(xf > THRESHOLD, xf, jnp.log1p(jnp.exp(jnp.minimum(xf, THRESHOLD))))
    return (sp - SHIFT).astype(x.dtype)


if __name__ == "__main__":
    key = jax.random.PRNGKey(0)
    k1, k2 = jax.random.split(key)

    # Small nodes x hidden feature matrix, consistent with SchNet usage.
    x = jax.random.normal(k1, (128, 256), dtype=jnp.float32) * 5.0
    y = shifted_softplus(x)
    jax.block_until_ready(y)
    assert jnp.allclose(y, shifted_softplus_ref(x), atol=1e-5, rtol=1e-5), "mismatch"

    # Awkward shape: exercises the padding / non-multiple-of-128 path.
    x2 = jax.random.normal(k2, (37, 100), dtype=jnp.float32) * 5.0
    y2 = shifted_softplus(x2)
    jax.block_until_ready(y2)
    assert jnp.allclose(y2, shifted_softplus_ref(x2), atol=1e-5, rtol=1e-5), "mismatch (padded)"

    print("KERNEL_OK")
</pallas_src>

<mosaic_0001>
module attributes {stable_mosaic.version = 11 : i64} {
  func.func @_shifted_softplus_kernel(%arg0: i32, %arg1: memref<32x1024xf32, #tpu.memory_space<vmem>>, %arg2: memref<32x1024xf32, #tpu.memory_space<vmem>>) attributes {dimension_semantics = [#tpu.dimension_semantics<parallel>], iteration_bounds = array<i64: 1>, scalar_prefetch = 0 : i64, scratch_operands = 0 : i64, tpu.core_type = #tpu.core_type<tc>, window_params = [{transform_indices = @transform_0, window_bounds = array<i64: 32, 1024>}, {transform_indices = @transform_1, window_bounds = array<i64: 32, 1024>}]} {
    %c0 = arith.constant 0 : index
    %c0_0 = arith.constant 0 : index
    %0 = vector.load %arg1[%c0, %c0_0] : memref<32x1024xf32, #tpu.memory_space<vmem>>, vector<32x1024xf32>
    %cst = arith.constant 2.000000e+01 : f32
    %1 = vector.broadcast %cst : f32 to vector<32x1024xf32>
    %2 = arith.cmpf ogt, %0, %1 : vector<32x1024xf32>
    %3 = math.exp %0 : vector<32x1024xf32>
    %4 = math.log1p %3 : vector<32x1024xf32>
    %5 = arith.select %2, %0, %4 : vector<32x1024xi1>, vector<32x1024xf32>
    %cst_1 = arith.constant 0.693147182 : f32
    %6 = vector.broadcast %cst_1 : f32 to vector<32x1024xf32>
    %7 = arith.subf %5, %6 : vector<32x1024xf32>
    %c0_2 = arith.constant 0 : index
    %c0_3 = arith.constant 0 : index
    %8 = vector.load %arg2[%c0_2, %c0_3] : memref<32x1024xf32, #tpu.memory_space<vmem>>, vector<32x1024xf32>
    tpu.vector_store %arg2[%c0_2, %c0_3], %7 {strides = array<i32>} : memref<32x1024xf32, #tpu.memory_space<vmem>>, vector<32x1024xf32>,
    return
  }
  func.func @transform_0(%arg0: i32) -> (i32, i32) {
    %c0_i32 = arith.constant 0 : i32
    %c0_i32_0 = arith.constant 0 : i32
    return %arg0, %c0_i32 : i32, i32
  }
  func.func @transform_1(%arg0: i32) -> (i32, i32) {
    %c0_i32 = arith.constant 0 : i32
    %c0_i32_0 = arith.constant 0 : i32
    return %arg0, %c0_i32 : i32, i32
  }
}

</mosaic_0001>

<bundles_post_ra>
// kernel: tpu_custom_call.1
= control target key start
LH: loop header
LB: loop body
LE: loop exit
PB: predicated region body
PF: predicated region fallthrough
CT: control target
= control target key end

     0   :  { %6 = vsyncpa [#allocation3], 0  ;;  %s1299_s0 = inlined_call_operand.hbm [shape: f32[32,1024], index: 0, kind: input, shape index: {}]   ;;  %s1300_s1 = inlined_call_operand.hbm [shape: f32[32,1024], index: 1, kind: output, shape index: {}]  }
   0x1   :  { %7 = vsyncpa [#allocation4], 0  ;;  %s764_s6 = smov [#allocation2]   ;;  %s716_s10 = scalar_lea.hbm %s1299_s0, 4096 }
   0x2   :  { %s13_s7 = sshll.u32 %s764_s6, 4  ;;  %p717_p0 = scmp.ne.s32.totalorder %s1299_s0, %s716_s10  ;;  %s14_s7 = int_to_ptr.vmem [resolvable:$true] %s13_s7 }
   0x3   :  { %p720_p1 = scmp.lt.u32.totalorder %s716_s10, %s1299_s0 }
   0x5   :  { %p722_p2 = pnand %p720_p1, %p717_p0 }
   0x7   :  { %725 = shalt.err (!%p722_p2)
}
   0x8   :  { %s726_s15 = scalar_lea.vmem %s14_s7, 4096  ;;  %p731_p4 = scmp.lt.s32.totalorder %s14_s7, %s14_s7 }
   0x9   :  { %p727_p3 = scmp.ne.s32.totalorder %s14_s7, %s726_s15  ;;  %p732_p5 = scmp.lt.s32.totalorder %s726_s15, %s726_s15 }
   0xb   :  { %p733_p6 = por %p732_p5, %p731_p4 }
   0xd   :  { %p734_p7 = pnand %p733_p6, %p727_p3 }
   0xf   :  { %737 = shalt.err (!%p734_p7)
}
  0x10   :  { %s765_s16 = smov 1024   ;;  %s766_s17 = smov 64  }
  0x11   :  { %19 = dma.hbm_to_vmem [thread:$0]  %s1299_s0, 4096, %s14_s7, [#allocation3], %s765_s16, %s765_s16, %s766_s17  }
  0x12   :  { %760 = dma.done.wait [#allocation3], 4096  }
  0x13   :  { %761 = vsyncadd [#allocation3], 4294963200  ;;  %v793_v0 = vld [vmem:[#allocation2] sm:$0xff]  ;;  %v795_v1 = vld [vmem:[#allocation2 + $0x8] sm:$0xff]  ;;  %s767_s0 = smov [#allocation5]  }
  0x14   :  { %v797_v2 = vld [vmem:[#allocation2 + $0x10] sm:$0xff]  ;;  %v87_v3 = vmul.f32 1.442695, %v793_v0  ;;  %v89_v4 = vmul.f32 1.442695, %v795_v1  ;;  %v802_v6 = vld [vmem:[#allocation2 + $0x18] sm:$0xff] }
  0x15   :  { %v91_v5 = vmul.f32 1.442695, %v797_v2  ;;  %v804_v7 = vld [vmem:[#allocation2 + $0x20] sm:$0xff]  ;;  %v806_v8 = vld [vmem:[#allocation2 + $0x28] sm:$0xff]  ;;  %v93_v9 = vmul.f32 1.442695, %v802_v6 }
  0x16   :  { %588 = vpow2.f32 %v87_v3  ;;  %v809_v10 = vld [vmem:[#allocation2 + $0x30] sm:$0xff]  ;;  %v811_v11 = vld [vmem:[#allocation2 + $0x38] sm:$0xff]  ;;  %v95_v12 = vmul.f32 1.442695, %v804_v7  ;;  %v97_v13 = vmul.f32 1.442695, %v806_v8 }
  0x17   :  { %590 = vpow2.f32 %v89_v4  ;;  %v815_v14 = vld [vmem:[#allocation2 + $0x40] sm:$0xff]  ;;  %v99_v15 = vmul.f32 1.442695, %v809_v10  ;;  %v818_v16 = vld [vmem:[#allocation2 + $0x48] sm:$0xff]  ;;  %v101_v17 = vmul.f32 1.442695, %v811_v11 }
  0x18   :  { %592 = vpow2.f32 %v91_v5  ;;  %v821_v18 = vld [vmem:[#allocation2 + $0x50] sm:$0xff]  ;;  %v103_v19 = vmul.f32 1.442695, %v815_v14  ;;  %v824_v20 = vld [vmem:[#allocation2 + $0x58] sm:$0xff]  ;;  %v105_v21 = vmul.f32 1.442695, %v818_v16 }
  0x19   :  { %594 = vpow2.f32 %v93_v9  ;;  %v827_v22 = vld [vmem:[#allocation2 + $0x60] sm:$0xff]  ;;  %v107_v23 = vmul.f32 1.442695, %v821_v18  ;;  %v109_v24 = vmul.f32 1.442695, %v824_v20  ;;  %v832_v31 = vld [vmem:[#allocation2 + $0x68] sm:$0xff] }
  0x1a   :  { %596 = vpow2.f32 %v95_v12  ;;  %v111_v25 = vmul.f32 1.442695, %v827_v22  ;;  %v834_v36 = vld [vmem:[#allocation2 + $0x70] sm:$0xff]  ;;  %v837_v41 = vmul.f32 1.442695, %v832_v31  ;;  %vm55_vm0 = vcmp.gt.f32.partialorder %v793_v0, 20.0 }
  0x1b   :  { %598 = vpow2.f32 %v97_v13  ;;  %v840_v45 = vmul.f32 1.442695, %v834_v36  ;;  %vm56_vm3 = vcmp.gt.f32.partialorder %v795_v1, 20.0  ;;  %vm57_vm4 = vcmp.gt.f32.partialorder %v797_v2, 20.0  ;;  %s540_s20 = sshll.u32 %s767_s0, 4  ;;  %s541_s20 = int_to_ptr.vmem [resolvable:$true] %s540_s20 }
  0x1c   :  { %600 = vpow2.f32 %v99_v15  ;;  %vm58_vm5 = vcmp.gt.f32.partialorder %v802_v6, 20.0  ;;  %vm59_vm8 = vcmp.gt.f32.partialorder %v804_v7, 20.0  ;;  %vm60_vm10 = vcmp.gt.f32.partialorder %v806_v8, 20.0  ;;  %s738_s21 = scalar_lea.vmem %s541_s20, 4096  ;;  %p743_p9 = scmp.lt.s32.totalorder %s541_s20, %s541_s20 }
  0x1d   :  { %602 = vpow2.f32 %v101_v17  ;;  %vm61_vm12 = vcmp.gt.f32.partialorder %v809_v10, 20.0  ;;  %vm62_vm14 = vcmp.gt.f32.partialorder %v811_v11, 20.0  ;;  %vm63_vm15 = vcmp.gt.f32.partialorder %v815_v14, 20.0  ;;  %p739_p8 = scmp.ne.s32.totalorder %s541_s20, %s738_s21  ;;  %p744_p10 = scmp.lt.s32.totalorder %s738_s21, %s738_s21 }
  0x1e   :  { %604 = vpow2.f32 %v103_v19 }
  0x1f   :  { %606 = vpow2.f32 %v105_v21  ;;  %p745_p11 = por %p744_p10, %p743_p9 }
  0x20   :  { %v589_v26 = vpop.eup %588  ;;  %608 = vpow2.f32 %v107_v23 }
  0x21   :  { %v591_v27 = vpop.eup %590  ;;  %v151_v28 = vadd.f32 1.0, %v589_v26  ;;  %v154_v29 = vmul.f32 -0.5, %v589_v26  ;;  %v157_v30 = vand.u32 2147483647, %v589_v26  ;;  %610 = vpow2.f32 %v109_v24  ;;  %p746_p12 = pnand %p745_p11, %p739_p8 }
  0x22   :  { %v593_v32 = vpop.eup %592  ;;  %v160_v33 = vadd.f32 1.0, %v591_v27  ;;  %v163_v34 = vmul.f32 -0.5, %v591_v27  ;;  %v166_v35 = vand.u32 2147483647, %v591_v27  ;;  %612 = vpow2.f32 %v111_v25 }
  0x23   :  { %v595_v37 = vpop.eup %594  ;;  %614 = vlog2.f32 %v151_v28  ;;  %v169_v38 = vadd.f32 1.0, %v593_v32  ;;  %v172_v40 = vmul.f32 -0.5, %v593_v32  ;;  %v155_v43 = vadd.f32 1.0, %v154_v29 }
  0x24   :  { %v597_v39 = vpop.eup %596  ;;  %616 = vlog2.f32 %v160_v33  ;;  %v178_v44 = vadd.f32 1.0, %v595_v37  ;;  %vm845_vm1 = vcmp.lt.f32.partialorder %v157_v30, 0.0004427343  ;;  %v164_v48 = vadd.f32 1.0, %v163_v34 }
  0x25   :  { %v599_v42 = vpop.eup %598  ;;  %618 = vlog2.f32 %v169_v38  ;;  %vm849_vm2 = vcmp.lt.f32.partialorder %v166_v35, 0.0004427343  ;;  %v181_v50 = vmul.f32 -0.5, %v595_v37  ;;  %v175_v52 = vand.u32 2147483647, %v593_v32 }
  0x26   :  { %v842_v46 = vpop.eup %600  ;;  %620 = vlog2.f32 %v178_v44  ;;  %v187_v53 = vadd.f32 1.0, %v597_v39  ;;  %v190_v54 = vmul.f32 -0.5, %v597_v39  ;;  %v173_v56 = vadd.f32 1.0, %v172_v40 }
  0x27   :  { %v853_v51 = vpop.eup %602  ;;  %v182_v57 = vadd.f32 1.0, %v181_v50  ;;  %v184_v58 = vand.u32 2147483647, %v595_v37  ;;  %v193_v59 = vand.u32 2147483647, %v597_v39  ;;  %v196_v62 = vadd.f32 1.0, %v599_v42 }
  0x28   :  { %v856_v55 = vpop.eup %604  ;;  %622 = vlog2.f32 %v187_v53  ;;  %v191_v61 = vadd.f32 1.0, %v190_v54  ;;  %v199_v63 = vmul.f32 -0.5, %v599_v42  ;;  %v156_v4 = vmul.f32 %v589_v26, %v155_v43 }
  0x29   :  { %v859_v60 = vpop.eup %606  ;;  %v165_v5 = vmul.f32 %v591_v27, %v164_v48  ;;  %v202_v9 = vand.u32 2147483647, %v599_v42  ;;  %v205_v12 = vadd.f32 1.0, %v842_v46  ;;  %vm867_vm6 = vcmp.lt.f32.partialorder %v175_v52, 0.0004427343 }
  0x2a   :  { %v861_v3 = vpop.eup %608  ;;  %624 = vlog2.f32 %v196_v62  ;;  %v200_v17 = vadd.f32 1.0, %v199_v63  ;;  %v208_v19 = vmul.f32 -0.5, %v842_v46  ;;  %v174_v23 = vmul.f32 %v593_v32, %v173_v56 }
  0x2b   :  { %v865_v13 = vpop.eup %610  ;;  %vm874_vm7 = vcmp.lt.f32.partialorder %v184_v58, 0.0004427343  ;;  %626 = vlog2.f32 %v205_v12  ;;  %v214_v25 = vadd.f32 1.0, %v853_v51  ;;  %v183_v27 = vmul.f32 %v595_v37, %v182_v57 }
  0x2c   :  { %v872_v21 = vpop.eup %612  ;;  %v192_v28 = vmul.f32 %v597_v39, %v191_v61  ;;  %vm880_vm9 = vcmp.lt.f32.partialorder %v193_v59, 0.0004427343  ;;  %v211_v30 = vand.u32 2147483647, %v842_v46  ;;  %vm886_vm11 = vcmp.lt.f32.partialorder %v202_v9, 0.0004427343 }
  0x2d   :  { %v615_v26 = vpop.eup %614  ;;  %628 = vlog2.f32 %v214_v25  ;;  %v223_v35 = vadd.f32 1.0, %v856_v55  ;;  %v201_v39 = vmul.f32 %v599_v42, %v200_v17  ;;  %v209_v40 = vadd.f32 1.0, %v208_v19 }
  0x2e   :  { %v617_v33 = vpop.eup %616  ;;  %v153_v32 = vmul.f32 0.6931472, %v615_v26  ;;  %v217_v43 = vmul.f32 -0.5, %v853_v51  ;;  %v226_v50 = vmul.f32 -0.5, %v856_v55  ;;  %vm901_vm13 = vcmp.lt.f32.partialorder %v211_v30, 0.0004427343 }
  0x2f   :  { %v619_v38 = vpop.eup %618  ;;  %v162_v37 = vmul.f32 0.6931472, %v617_v33  ;;  %630 = vlog2.f32 %v223_v35  ;;  %v220_v47 = vand.u32 2147483647, %v853_v51  ;;  %v232_v9 = vadd.f32 1.0, %v859_v60 }
  0x30   :  { %v159_v44 = vsel %vm845_vm1, %v156_v4, %v153_v32  ;;  %v171_v48 = vmul.f32 0.6931472, %v619_v38  ;;  %v621_v52 = vpop.eup %620  ;;  %v218_v62 = vadd.f32 1.0, %v217_v43  ;;  %v227_v63 = vadd.f32 1.0, %v226_v50 }
  0x31   :  { %v439_v53 = vsel %vm55_vm0, %v793_v0, %v159_v44  ;;  %v168_v42 = vsel %vm849_vm2, %v165_v5, %v162_v37  ;;  %v180_v0 = vmul.f32 0.6931472, %v621_v52  ;;  %vm923_vm0 = vcmp.lt.f32.partialorder %v220_v47, 0.0004427343 }
  0x32   :  { %v552_v56 = vadd.f32 -0.6931472, %v439_v53  ;;  %v440_v57 = vsel %vm56_vm3, %v795_v1, %v168_v42  ;;  %v177_v58 = vsel %vm867_vm6, %v174_v23, %v171_v48  ;;  %v623_v59 = vpop.eup %622  ;;  %v229_v19 = vand.u32 2147483647, %v856_v55 }
  0x33   :  { %v553_v49 = vadd.f32 -0.6931472, %v440_v57  ;;  %v441_v61 = vsel %vm57_vm4, %v797_v2, %v177_v58  ;;  %v186_v5 = vsel %vm874_vm7, %v183_v27, %v180_v0  ;;  %v189_v1 = vmul.f32 0.6931472, %v623_v59  ;;  %v968_v0 = vld [vmem:[#allocation2 + $0x88] sm:$0xff] }
  0x34   :  { %503 = vst [vmem:[#allocation5] sm:$0xff] %v552_v56  ;;  %v554_v4 = vadd.f32 -0.6931472, %v441_v61  ;;  %v625_v12 = vpop.eup %624  ;;  %v442_v15 = vsel %vm58_vm5, %v802_v6, %v186_v5  ;;  %v210_v2 = vmul.f32 %v842_v46, %v209_v40  ;;  %632 = vlog2.f32 %v232_v9  ;;  %v946_v40 = vld [vmem:[#allocation2 + $0x78] sm:$0xff]  ;;  %v975_v61 = vld [vmem:[#allocation2 + $0x90] sm:$0xff] }
  0x35   :  { %504 = vst [vmem:[#allocation5 + $0x8] sm:$0xff] %v553_v49  ;;  %v627_v23 = vpop.eup %626  ;;  %v555_v24 = vadd.f32 -0.6931472, %v442_v15  ;;  %v195_v25 = vsel %vm880_vm9, %v192_v28, %v189_v1  ;;  %v198_v26 = vmul.f32 0.6931472, %v625_v12  ;;  %v219_v46 = vmul.f32 %v853_v51, %v218_v62  ;;  %v986_v12 = vld [vmem:[#allocation2 + $0x98] sm:$0xff] }
  0x36   :  { %505 = vst [vmem:[#allocation5 + $0x10] sm:$0xff] %v554_v4  ;;  %v443_v6 = vsel %vm59_vm8, %v804_v7, %v195_v25  ;;  %v207_v27 = vmul.f32 0.6931472, %v627_v23  ;;  %v235_v30 = vmul.f32 -0.5, %v859_v60  ;;  %v228_v29 = vmul.f32 %v856_v55, %v227_v63  ;;  %v999_v23 = vld [vmem:[#allocation2 + $0xa8] sm:$0xff] }
  0x37   :  { %v629_v33 = vpop.eup %628  ;;  %506 = vst [vmem:[#allocation5 + $0x18] sm:$0xff] %v555_v24  ;;  %v556_v32 = vadd.f32 -0.6931472, %v443_v6  ;;  %v204_v35 = vsel %vm886_vm11, %v201_v39, %v198_v26  ;;  %v241_v28 = vadd.f32 1.0, %v861_v3  ;;  %vm64_vm1 = vcmp.gt.f32.partialorder %v818_v16, 20.0  ;;  %v1004_v26 = vld [vmem:[#allocation2 + $0xb0] sm:$0xff] }
  0x38   :  { %v444_v38 = vsel %vm60_vm10, %v806_v8, %v204_v35  ;;  %v213_v7 = vsel %vm901_vm13, %v210_v2, %v207_v27  ;;  %v216_v51 = vmul.f32 0.6931472, %v629_v33  ;;  %v244_v37 = vmul.f32 -0.5, %v861_v3  ;;  %v955_v8 = vld [vmem:[#allocation2 + $0x80] sm:$0xff]  ;;  %v1011_v33 = vld [vmem:[#allocation2 + $0xb8] sm:$0xff] }
  0x39   :  { %v631_v34 = vpop.eup %630  ;;  %507 = vst [vmem:[#allocation5 + $0x20] sm:$0xff] %v556_v32  ;;  %v557_v39 = vadd.f32 -0.6931472, %v444_v38  ;;  %v445_v55 = vsel %vm61_vm12, %v809_v10, %v213_v7  ;;  %vm951_vm2 = vcmp.lt.f32.partialorder %v229_v19, 0.0004427343  ;;  %634 = vlog2.f32 %v241_v28 }
  0x3a   :  { %v558_v44 = vadd.f32 -0.6931472, %v445_v55  ;;  %v222_v48 = vsel %vm923_vm0, %v219_v46, %v216_v51  ;;  %v225_v50 = vmul.f32 0.6931472, %v631_v34  ;;  %v236_v52 = vadd.f32 1.0, %v235_v30  ;;  %v1020_v51 = vld [vmem:[#allocation2 + $0xc0] sm:$0xff] }
  0x3b   :  { %508 = vst [vmem:[#allocation5 + $0x28] sm:$0xff] %v557_v39  ;;  %v446_v53 = vsel %vm62_vm14, %v811_v11, %v222_v48  ;;  %v238_v10 = vand.u32 2147483647, %v859_v60  ;;  %v250_v42 = vadd.f32 1.0, %v865_v13  ;;  %v117_v54 = vmul.f32 1.442695, %v946_v40 }
  0x3c   :  { %509 = vst [vmem:[#allocation5 + $0x30] sm:$0xff] %v558_v44  ;;  %v559_v47 = vadd.f32 -0.6931472, %v446_v53  ;;  %v231_v56 = vsel %vm951_vm2, %v228_v29, %v225_v50  ;;  %v245_v57 = vadd.f32 1.0, %v244_v37  ;;  %v119_v58 = vmul.f32 1.442695, %v955_v8 }
  0x3d   :  { %v447_v11 = vsel %vm63_vm15, %v815_v14, %v231_v56  ;;  %v247_v59 = vand.u32 2147483647, %v861_v3  ;;  %636 = vlog2.f32 %v250_v42  ;;  %v259_v49 = vadd.f32 1.0, %v872_v21 }
  0x3e   :  { %510 = vst [vmem:[#allocation5 + $0x38] sm:$0xff] %v559_v47  ;;  %v560_v62 = vadd.f32 -0.6931472, %v447_v11  ;;  %v237_v63 = vmul.f32 %v859_v60, %v236_v52  ;;  %v253_v4 = vmul.f32 -0.5, %v865_v13  ;;  %638 = vpow2.f32 %v837_v41  ;;  %v633_v5 = vpop.eup %632  ;;  %v991_v60 = vld [vmem:[#allocation2 + $0xa0] sm:$0xff] }
  0x3f   :  { %vm980_vm3 = vcmp.lt.f32.partialorder %v238_v10, 0.0004427343  ;;  %640 = vlog2.f32 %v259_v49  ;;  %v262_v14 = vmul.f32 -0.5, %v872_v21  ;;  %v121_v9 = vmul.f32 1.442695, %v968_v0 }
  0x40   :  { %511 = vst [vmem:[#allocation5 + $0x40] sm:$0xff] %v560_v62  ;;  %v234_v15 = vmul.f32 0.6931472, %v633_v5  ;;  %vm65_vm4 = vcmp.gt.f32.partialorder %v821_v18, 20.0  ;;  %642 = vpow2.f32 %v840_v45  ;;  %v123_v41 = vmul.f32 1.442695, %v975_v61 }
  0x41   :  { %v246_v2 = vmul.f32 %v861_v3, %v245_v57  ;;  %vm994_vm5 = vcmp.lt.f32.partialorder %v247_v59, 0.0004427343  ;;  %v256_v19 = vand.u32 2147483647, %v865_v13  ;;  %644 = vpow2.f32 %v117_v54  ;;  %v1043_v62 = vld [vmem:[#allocation2 + $0xc8] sm:$0xff] }
  0x42   :  { %v240_v24 = vsel %vm980_vm3, %v237_v63, %v234_v15  ;;  %v254_v25 = vadd.f32 1.0, %v253_v4  ;;  %646 = vpow2.f32 %v119_v58  ;;  %v125_v45 = vmul.f32 1.442695, %v986_v12 }
  0x43   :  { %v635_v6 = vpop.eup %634  ;;  %v448_v3 = vsel %vm64_vm1, %v818_v16, %v240_v24  ;;  %v263_v27 = vadd.f32 1.0, %v262_v14  ;;  %v265_v46 = vand.u32 2147483647, %v872_v21  ;;  %v127_v30 = vmul.f32 1.442695, %v991_v60 }
  0x44   :  { %v561_v32 = vadd.f32 -0.6931472, %v448_v3  ;;  %v243_v35 = vmul.f32 0.6931472, %v635_v6  ;;  %648 = vpow2.f32 %v121_v9  ;;  %v129_v29 = vmul.f32 1.442695, %v999_v23 }
  0x45   :  { %vm66_vm6 = vcmp.gt.f32.partialorder %v824_v20, 20.0  ;;  %650 = vpow2.f32 %v123_v41  ;;  %v131_v28 = vmul.f32 1.442695, %v1004_v26  ;;  %v255_v38 = vmul.f32 %v865_v13, %v254_v25 }
  0x46   :  { %512 = vst [vmem:[#allocation5 + $0x48] sm:$0xff] %v561_v32  ;;  %v249_v16 = vsel %vm994_vm5, %v246_v2, %v243_v35  ;;  %652 = vpow2.f32 %v125_v45  ;;  %v133_v7 = vmul.f32 1.442695, %v1011_v33  ;;  %vm1025_vm7 = vcmp.lt.f32.partialorder %v256_v19, 0.0004427343 }
  0x47   :  { %v637_v37 = vpop.eup %636  ;;  %v449_v34 = vsel %vm65_vm4, %v821_v18, %v249_v16  ;;  %vm1029_vm8 = vcmp.lt.f32.partialorder %v265_v46, 0.0004427343  ;;  %654 = vpow2.f32 %v127_v30  ;;  %v264_v48 = vmul.f32 %v872_v21, %v263_v27 }
  0x48   :  { %v639_v13 = vpop.eup %638  ;;  %v562_v43 = vadd.f32 -0.6931472, %v449_v34  ;;  %v252_v44 = vmul.f32 0.6931472, %v637_v37  ;;  %656 = vpow2.f32 %v129_v29  ;;  %v135_v18 = vmul.f32 1.442695, %v1020_v51 }
  0x49   :  { %v641_v50 = vpop.eup %640  ;;  %v268_v52 = vadd.f32 1.0, %v639_v13  ;;  %v271_v53 = vmul.f32 -0.5, %v639_v13  ;;  %658 = vpow2.f32 %v131_v28  ;;  %vm67_vm9 = vcmp.gt.f32.partialorder %v827_v22, 20.0 }
  0x4a   :  { %v643_v10 = vpop.eup %642  ;;  %513 = vst [vmem:[#allocation5 + $0x50] sm:$0xff] %v562_v43  ;;  %v258_v42 = vsel %vm1025_vm7, %v255_v38, %v252_v44  ;;  %v261_v54 = vmul.f32 0.6931472, %v641_v50  ;;  %660 = vpow2.f32 %v133_v7  ;;  %v274_v56 = vand.u32 2147483647, %v639_v13 }
  0x4b   :  { %v645_v47 = vpop.eup %644  ;;  %v450_v21 = vsel %vm66_vm6, %v824_v20, %v258_v42  ;;  %662 = vlog2.f32 %v268_v52  ;;  %v277_v59 = vadd.f32 1.0, %v643_v10  ;;  %v280_v49 = vmul.f32 -0.5, %v643_v10 }
  0x4c   :  { %v647_v57 = vpop.eup %646  ;;  %v563_v58 = vadd.f32 -0.6931472, %v450_v21  ;;  %v267_v11 = vsel %vm1029_vm8, %v264_v48, %v261_v54  ;;  %v272_v4 = vadd.f32 1.0, %v271_v53  ;;  %v286_v5 = vadd.f32 1.0, %v645_v47 }
  0x4d   :  { %v451_v63 = vsel %vm67_vm9, %v827_v22, %v267_v11  ;;  %664 = vpow2.f32 %v135_v18  ;;  %v283_v20 = vand.u32 2147483647, %v643_v10  ;;  %v289_v9 = vmul.f32 -0.5, %v645_v47 }
  0x4e   :  { %v649_v1 = vpop.eup %648  ;;  %514 = vst [vmem:[#allocation5 + $0x58] sm:$0xff] %v563_v58  ;;  %v564_v14 = vadd.f32 -0.6931472, %v451_v63  ;;  %666 = vlog2.f32 %v277_v59  ;;  %vm68_vm10 = vcmp.gt.f32.partialorder %v832_v31, 20.0  ;;  %v295_v41 = vadd.f32 1.0, %v647_v57 }
  0x4f   :  { %v1046_v15 = vpop.eup %650  ;;  %668 = vlog2.f32 %v286_v5  ;;  %v1050_v2 = vmul.f32 1.442695, %v1043_v62  ;;  %v281_v22 = vadd.f32 1.0, %v280_v49  ;;  %v290_v19 = vadd.f32 1.0, %v289_v9 }
  0x50   :  { %v1052_v17 = vpop.eup %652  ;;  %515 = vst [vmem:[#allocation5 + $0x60] sm:$0xff] %v564_v14  ;;  %v292_v24 = vand.u32 2147483647, %v645_v47  ;;  %v298_v25 = vmul.f32 -0.5, %v647_v57  ;;  %vm69_vm11 = vcmp.gt.f32.partialorder %v834_v36, 20.0  ;;  %670 = vlog2.f32 %v295_v41 }
  0x51   :  { %v1054_v45 = vpop.eup %654  ;;  %v301_v6 = vand.u32 2147483647, %v647_v57  ;;  %v304_v3 = vadd.f32 1.0, %v649_v1  ;;  %v307_v27 = vmul.f32 -0.5, %v649_v1  ;;  %v273_v30 = vmul.f32 %v639_v13, %v272_v4 }
  0x52   :  { %v1057_v46 = vpop.eup %656  ;;  %vm1059_vm12 = vcmp.lt.f32.partialorder %v274_v56, 0.0004427343  ;;  %vm1063_vm13 = vcmp.lt.f32.partialorder %v283_v20, 0.0004427343  ;;  %vm70_vm14 = vcmp.gt.f32.partialorder %v946_v40, 20.0  ;;  %v299_v29 = vadd.f32 1.0, %v298_v25 }
  0x53   :  { %v1068_v28 = vpop.eup %658  ;;  %672 = vlog2.f32 %v304_v3  ;;  %v310_v16 = vand.u32 2147483647, %v649_v1  ;;  %v313_v38 = vadd.f32 1.0, %v1046_v15  ;;  %v316_v7 = vmul.f32 -0.5, %v1046_v15 }
  0x54   :  { %v1072_v37 = vpop.eup %660  ;;  %v282_v34 = vmul.f32 %v643_v10, %v281_v22  ;;  %vm71_vm15 = vcmp.gt.f32.partialorder %v955_v8, 20.0  ;;  %v308_v39 = vadd.f32 1.0, %v307_v27  ;;  %v319_v55 = vand.u32 2147483647, %v1046_v15 }
  0x55   :  { %v322_v13 = vadd.f32 1.0, %v1052_v17  ;;  %v663_v43 = vpop.eup %662  ;;  %v291_v44 = vmul.f32 %v645_v47, %v290_v19  ;;  %vm1077_vm0 = vcmp.lt.f32.partialorder %v292_v24, 0.0004427343  ;;  %vm1081_vm1 = vcmp.lt.f32.partialorder %v301_v6, 0.0004427343  ;;  %v1180_v19 = vld [vmem:[#allocation2 + $0xe8] sm:$0xff] }
  0x56   :  { %674 = vlog2.f32 %v313_v38  ;;  %v270_v52 = vmul.f32 0.6931472, %v663_v43  ;;  %v300_v53 = vmul.f32 %v647_v57, %v299_v29  ;;  %vm72_vm2 = vcmp.gt.f32.partialorder %v968_v0, 20.0 }
  0x57   :  { %v317_v18 = vadd.f32 1.0, %v316_v7  ;;  %676 = vlog2.f32 %v322_v13  ;;  %v1086_v10 = vpop.eup %664  ;;  %vm1088_vm3 = vcmp.lt.f32.partialorder %v310_v16, 0.0004427343  ;;  %v325_v54 = vmul.f32 -0.5, %v1052_v17 }
  0x58   :  { %v328_v47 = vand.u32 2147483647, %v1052_v17  ;;  %v331_v21 = vadd.f32 1.0, %v1054_v45  ;;  %v667_v56 = vpop.eup %666  ;;  %v276_v57 = vsel %vm1059_vm12, %v273_v30, %v270_v52  ;;  %v309_v58 = vmul.f32 %v649_v1, %v308_v39 }
  0x59   :  { %vm73_vm4 = vcmp.gt.f32.partialorder %v975_v61, 20.0  ;;  %vm1098_vm5 = vcmp.lt.f32.partialorder %v319_v55, 0.0004427343  ;;  %v340_v59 = vadd.f32 1.0, %v1057_v46  ;;  %v669_v49 = vpop.eup %668  ;;  %v452_v63 = vsel %vm68_vm10, %v832_v31, %v276_v57  ;;  %v1159_v57 = vld [vmem:[#allocation2 + $0xd0] sm:$0xff] }
  0x5a   :  { %v279_v4 = vmul.f32 0.6931472, %v667_v56  ;;  %vm74_vm6 = vcmp.gt.f32.partialorder %v986_v12, 20.0  ;;  %678 = vlog2.f32 %v331_v21  ;;  %v334_v5 = vmul.f32 -0.5, %v1054_v45  ;;  %v671_v9 = vpop.eup %670 }
  0x5b   :  { %v565_v1 = vadd.f32 -0.6931472, %v452_v63  ;;  %v288_v14 = vmul.f32 0.6931472, %v669_v49  ;;  %v318_v20 = vmul.f32 %v1046_v15, %v317_v18  ;;  %680 = vlog2.f32 %v340_v59  ;;  %v1164_v63 = vld [vmem:[#allocation2 + $0xd8] sm:$0xff] }
  0x5c   :  { %v285_v41 = vsel %vm1063_vm13, %v282_v34, %v279_v4  ;;  %v326_v22 = vadd.f32 1.0, %v325_v54  ;;  %vm1111_vm7 = vcmp.lt.f32.partialorder %v328_v47, 0.0004427343  ;;  %v343_v31 = vmul.f32 -0.5, %v1057_v46 }
  0x5d   :  { %516 = vst [vmem:[#allocation5 + $0x68] sm:$0xff] %v565_v1  ;;  %v453_v24 = vsel %vm69_vm11, %v834_v36, %v285_v41  ;;  %v294_v15 = vsel %vm1077_vm0, %v291_v44, %v288_v14  ;;  %v297_v25 = vmul.f32 0.6931472, %v671_v9  ;;  %vm75_vm8 = vcmp.gt.f32.partialorder %v991_v60, 20.0  ;;  %v673_v3 = vpop.eup %672  ;;  %v1172_v9 = vld [vmem:[#allocation2 + $0xe0] sm:$0xff] }
  0x5e   :  { %v337_v6 = vand.u32 2147483647, %v1054_v45  ;;  %v566_v27 = vadd.f32 -0.6931472, %v453_v24  ;;  %v454_v30 = vsel %vm70_vm14, %v946_v40, %v294_v15  ;;  %v335_v32 = vadd.f32 1.0, %v334_v5 }
  0x5f   :  { %vm76_vm9 = vcmp.gt.f32.partialorder %v999_v23, 20.0  ;;  %v346_v35 = vand.u32 2147483647, %v1057_v46  ;;  %v567_v36 = vadd.f32 -0.6931472, %v454_v30  ;;  %v303_v29 = vsel %vm1081_vm1, %v300_v53, %v297_v25  ;;  %v1191_v30 = vld [vmem:[#allocation2 + $0xf8] sm:$0xff] }
  0x60   :  { %v306_v16 = vmul.f32 0.6931472, %v673_v3  ;;  %v349_v38 = vadd.f32 1.0, %v1068_v28  ;;  %v675_v7 = vpop.eup %674  ;;  %517 = vst [vmem:[#allocation5 + $0x70] sm:$0xff] %v566_v27  ;;  %v455_v34 = vsel %vm71_vm15, %v955_v8, %v303_v29  ;;  %v327_v40 = vmul.f32 %v1052_v17, %v326_v22 }
  0x61   :  { %v344_v39 = vadd.f32 1.0, %v343_v31  ;;  %v352_v55 = vmul.f32 -0.5, %v1068_v28  ;;  %v677_v13 = vpop.eup %676  ;;  %518 = vst [vmem:[#allocation5 + $0x78] sm:$0xff] %v567_v36  ;;  %v568_v43 = vadd.f32 -0.6931472, %v455_v34  ;;  %v336_v8 = vmul.f32 %v1054_v45, %v335_v32 }
  0x62   :  { %v312_v44 = vsel %vm1088_vm3, %v309_v58, %v306_v16  ;;  %v315_v48 = vmul.f32 0.6931472, %v675_v7  ;;  %682 = vlog2.f32 %v349_v38  ;;  %v324_v52 = vmul.f32 0.6931472, %v677_v13 }
  0x63   :  { %v456_v50 = vsel %vm72_vm2, %v968_v0, %v312_v44  ;;  %vm1142_vm10 = vcmp.lt.f32.partialorder %v337_v6, 0.0004427343  ;;  %519 = vst [vmem:[#allocation5 + $0x80] sm:$0xff] %v568_v43  ;;  %vm1148_vm11 = vcmp.lt.f32.partialorder %v346_v35, 0.0004427343  ;;  %v358_v54 = vadd.f32 1.0, %v1072_v37 }
  0x64   :  { %v569_v53 = vadd.f32 -0.6931472, %v456_v50  ;;  %v321_v18 = vsel %vm1098_vm5, %v318_v20, %v315_v48  ;;  %v679_v47 = vpop.eup %678  ;;  %v330_v45 = vsel %vm1111_vm7, %v327_v40, %v324_v52  ;;  %v345_v21 = vmul.f32 %v1057_v46, %v344_v39  ;;  %v1187_v6 = vld [vmem:[#allocation2 + $0xf0] sm:$0xff] }
  0x65   :  { %v457_v0 = vsel %vm73_vm4, %v975_v61, %v321_v18  ;;  %v353_v56 = vadd.f32 1.0, %v352_v55  ;;  %v681_v58 = vpop.eup %680  ;;  %v458_v59 = vsel %vm74_vm6, %v986_v12, %v330_v45  ;;  %v333_v49 = vmul.f32 0.6931472, %v679_v47 }
  0x66   :  { %520 = vst [vmem:[#allocation5 + $0x88] sm:$0xff] %v569_v53  ;;  %v570_v11 = vadd.f32 -0.6931472, %v457_v0  ;;  %684 = vlog2.f32 %v358_v54  ;;  %v571_v61 = vadd.f32 -0.6931472, %v458_v59  ;;  %v361_v5 = vmul.f32 -0.5, %v1072_v37 }
  0x67   :  { %v342_v4 = vmul.f32 0.6931472, %v681_v58  ;;  %v367_v46 = vadd.f32 1.0, %v1086_v10  ;;  %v339_v1 = vsel %vm1142_vm10, %v336_v8, %v333_v49  ;;  %v355_v14 = vand.u32 2147483647, %v1068_v28 }
  0x68   :  { %521 = vst [vmem:[#allocation5 + $0x90] sm:$0xff] %v570_v11  ;;  %v139_v20 = vmul.f32 1.442695, %v1159_v57  ;;  %522 = vst [vmem:[#allocation5 + $0x98] sm:$0xff] %v571_v61  ;;  %v459_v12 = vsel %vm75_vm8, %v991_v60, %v339_v1  ;;  %v141_v22 = vmul.f32 1.442695, %v1164_v63  ;;  %v354_v15 = vmul.f32 %v1068_v28, %v353_v56 }
  0x69   :  { %v348_v41 = vsel %vm1148_vm11, %v345_v21, %v342_v4  ;;  %686 = vlog2.f32 %v367_v46  ;;  %v572_v31 = vadd.f32 -0.6931472, %v459_v12  ;;  %v370_v25 = vmul.f32 -0.5, %v1086_v10 }
  0x6a   :  { %v460_v24 = vsel %vm76_vm9, %v999_v23, %v348_v41  ;;  %v362_v3 = vadd.f32 1.0, %v361_v5  ;;  %688 = vpow2.f32 %v1050_v2  ;;  %v143_v27 = vmul.f32 1.442695, %v1172_v9 }
  0x6b   :  { %v573_v60 = vadd.f32 -0.6931472, %v460_v24  ;;  %523 = vst [vmem:[#allocation5 + $0xa0] sm:$0xff] %v572_v31  ;;  %vm1193_vm12 = vcmp.lt.f32.partialorder %v355_v14, 0.0004427343  ;;  %690 = vpow2.f32 %v139_v20  ;;  %vm77_vm13 = vcmp.gt.f32.partialorder %v1004_v26, 20.0 }
  0x6c   :  { %v683_v32 = vpop.eup %682  ;;  %v364_v23 = vand.u32 2147483647, %v1072_v37  ;;  %v145_v28 = vmul.f32 1.442695, %v1180_v19  ;;  %692 = vpow2.f32 %v141_v22  ;;  %v147_v2 = vmul.f32 1.442695, %v1187_v6 }
  0x6d   :  { %524 = vst [vmem:[#allocation5 + $0xa8] sm:$0xff] %v573_v60  ;;  %v351_v36 = vmul.f32 0.6931472, %v683_v32  ;;  %v371_v29 = vadd.f32 1.0, %v370_v25  ;;  %v373_v16 = vand.u32 2147483647, %v1086_v10  ;;  %694 = vpow2.f32 %v143_v27 }
  0x6e   :  { %v363_v7 = vmul.f32 %v1072_v37, %v362_v3  ;;  %696 = vpow2.f32 %v145_v28  ;;  %v149_v34 = vmul.f32 1.442695, %v1191_v30  ;;  %vm365_vm14 = vcmp.lt.f32.partialorder %v364_v23, 0.0004427343 }
  0x6f   :  { %v357_v38 = vsel %vm1193_vm12, %v354_v15, %v351_v36  ;;  %vm78_vm15 = vcmp.gt.f32.partialorder %v1011_v33, 20.0  ;;  %698 = vpow2.f32 %v147_v2  ;;  %v372_v43 = vmul.f32 %v1086_v10, %v371_v29 }
  0x70   :  { %v685_v40 = vpop.eup %684  ;;  %v461_v39 = vsel %vm77_vm13, %v1004_v26, %v357_v38  ;;  %vm374_vm0 = vcmp.lt.f32.partialorder %v373_v16, 0.0004427343  ;;  %700 = vpow2.f32 %v149_v34  ;;  %vm79_vm1 = vcmp.gt.f32.partialorder %v1020_v51, 20.0 }
  0x71   :  { %v574_v55 = vadd.f32 -0.6931472, %v461_v39  ;;  %v360_v13 = vmul.f32 0.6931472, %v685_v40  ;;  %vm80_vm2 = vcmp.gt.f32.partialorder %v1043_v62, 20.0  ;;  %vm81_vm3 = vcmp.gt.f32.partialorder %v1159_v57, 20.0 }
  0x72   :  { %vm82_vm4 = vcmp.gt.f32.partialorder %v1164_v63, 20.0  ;;  %vm83_vm5 = vcmp.gt.f32.partialorder %v1172_v9, 20.0  ;;  %vm84_vm9 = vcmp.gt.f32.partialorder %v1180_v19, 20.0  ;;  %vm85_vm12 = vcmp.gt.f32.partialorder %v1187_v6, 20.0 }
  0x73   :  { %v687_v44 = vpop.eup %686  ;;  %525 = vst [vmem:[#allocation5 + $0xb0] sm:$0xff] %v574_v55  ;;  %v366_v48 = vsel %vm365_vm14, %v363_v7, %v360_v13 }
  0x74   :  { %v462_v37 = vsel %vm78_vm15, %v1011_v33, %v366_v48  ;;  %v369_v50 = vmul.f32 0.6931472, %v687_v44  ;;  %v689_v52 = vpop.eup %688  ;;  %vm86_vm15 = vcmp.gt.f32.partialorder %v1191_v30, 20.0 }
  0x75   :  { %v575_v26 = vadd.f32 -0.6931472, %v462_v37  ;;  %v691_v8 = vpop.eup %690  ;;  %v376_v53 = vadd.f32 1.0, %v689_v52  ;;  %v379_v45 = vmul.f32 -0.5, %v689_v52  ;;  %v382_v61 = vand.u32 2147483647, %v689_v52 }
  0x76   :  { %v375_v17 = vsel %vm374_vm0, %v372_v43, %v369_v50  ;;  %v693_v18 = vpop.eup %692  ;;  %v385_v10 = vadd.f32 1.0, %v691_v8  ;;  %v388_v21 = vmul.f32 -0.5, %v691_v8  ;;  %v391_v4 = vand.u32 2147483647, %v691_v8 }
  0x77   :  { %526 = vst [vmem:[#allocation5 + $0xb8] sm:$0xff] %v575_v26  ;;  %v463_v42 = vsel %vm79_vm1, %v1020_v51, %v375_v17  ;;  %v695_v54 = vpop.eup %694  ;;  %702 = vlog2.f32 %v376_v53  ;;  %v394_v33 = vadd.f32 1.0, %v693_v18  ;;  %v397_v11 = vmul.f32 -0.5, %v693_v18 }
  0x78   :  { %v576_v47 = vadd.f32 -0.6931472, %v463_v42  ;;  %v1212_v0 = vpop.eup %696  ;;  %704 = vlog2.f32 %v385_v10  ;;  %v403_v56 = vadd.f32 1.0, %v695_v54  ;;  %v380_v49 = vadd.f32 1.0, %v379_v45 }
  0x79   :  { %v1214_v58 = vpop.eup %698  ;;  %706 = vlog2.f32 %v394_v33  ;;  %v412_v51 = vadd.f32 1.0, %v1212_v0  ;;  %v406_v5 = vmul.f32 -0.5, %v695_v54  ;;  %v389_v46 = vadd.f32 1.0, %v388_v21 }
  0x7a   :  { %527 = vst [vmem:[#allocation5 + $0xc0] sm:$0xff] %v576_v47  ;;  %708 = vlog2.f32 %v403_v56  ;;  %v1218_v59 = vpop.eup %700  ;;  %v415_v1 = vmul.f32 -0.5, %v1212_v0  ;;  %v421_v14 = vadd.f32 1.0, %v1214_v58  ;;  %v400_v20 = vand.u32 2147483647, %v693_v18 }
  0x7b   :  { %710 = vlog2.f32 %v412_v51  ;;  %v398_v12 = vadd.f32 1.0, %v397_v11  ;;  %v409_v41 = vand.u32 2147483647, %v695_v54  ;;  %v430_v22 = vadd.f32 1.0, %v1218_v59 }
  0x7c   :  { %712 = vlog2.f32 %v421_v14  ;;  %v381_v31 = vmul.f32 %v689_v52, %v380_v49  ;;  %vm1226_vm6 = vcmp.lt.f32.partialorder %v382_v61, 0.0004427343  ;;  %v407_v15 = vadd.f32 1.0, %v406_v5 }
  0x7d   :  { %v424_v25 = vmul.f32 -0.5, %v1214_v58  ;;  %v390_v3 = vmul.f32 %v691_v8, %v389_v46  ;;  %vm1231_vm7 = vcmp.lt.f32.partialorder %v391_v4, 0.0004427343  ;;  %v416_v32 = vadd.f32 1.0, %v415_v1 }
  0x7e   :  { %714 = vlog2.f32 %v430_v22  ;;  %vm1235_vm8 = vcmp.lt.f32.partialorder %v400_v20, 0.0004427343  ;;  %v433_v36 = vmul.f32 -0.5, %v1218_v59  ;;  %v399_v29 = vmul.f32 %v693_v18, %v398_v12 }
  0x7f   :  { %vm1241_vm10 = vcmp.lt.f32.partialorder %v409_v41, 0.0004427343  ;;  %v418_v38 = vand.u32 2147483647, %v1212_v0  ;;  %v408_v40 = vmul.f32 %v695_v54, %v407_v15  ;;  %v425_v39 = vadd.f32 1.0, %v424_v25 }
  0x80   :  { %v427_v55 = vand.u32 2147483647, %v1214_v58  ;;  %v417_v37 = vmul.f32 %v1212_v0, %v416_v32  ;;  %v434_v8 = vadd.f32 1.0, %v433_v36  ;;  %v436_v42 = vand.u32 2147483647, %v1218_v59 }
  0x81   :  { %v703_v60 = vpop.eup %702  ;;  %vm1260_vm11 = vcmp.lt.f32.partialorder %v418_v38, 0.0004427343  ;;  %v426_v47 = vmul.f32 %v1214_v58, %v425_v39 }
  0x82   :  { %v705_v35 = vpop.eup %704  ;;  %v378_v23 = vmul.f32 0.6931472, %v703_v60  ;;  %vm428_vm13 = vcmp.lt.f32.partialorder %v427_v55, 0.0004427343  ;;  %v435_v11 = vmul.f32 %v1218_v59, %v434_v8  ;;  %vm437_vm14 = vcmp.lt.f32.partialorder %v436_v42, 0.0004427343 }
  0x83   :  { %v387_v2 = vmul.f32 0.6931472, %v705_v35  ;;  %v707_v7 = vpop.eup %706 }
  0x84   :  { %v384_v34 = vsel %vm1226_vm6, %v381_v31, %v378_v23  ;;  %v709_v13 = vpop.eup %708  ;;  %v396_v48 = vmul.f32 0.6931472, %v707_v7 }
  0x85   :  { %v464_v43 = vsel %vm80_vm2, %v1043_v62, %v384_v34  ;;  %v393_v44 = vsel %vm1231_vm7, %v390_v3, %v387_v2  ;;  %v405_v26 = vmul.f32 0.6931472, %v709_v13  ;;  %v711_v17 = vpop.eup %710 }
  0x86   :  { %v577_v50 = vadd.f32 -0.6931472, %v464_v43  ;;  %v465_v52 = vsel %vm81_vm3, %v1159_v57, %v393_v44  ;;  %v402_v18 = vsel %vm1235_vm8, %v399_v29, %v396_v48  ;;  %v414_v54 = vmul.f32 0.6931472, %v711_v17  ;;  %v713_v0 = vpop.eup %712 }
  0x87   :  { %v578_v53 = vadd.f32 -0.6931472, %v465_v52  ;;  %v466_v10 = vsel %vm82_vm4, %v1164_v63, %v402_v18  ;;  %v411_v57 = vsel %vm1241_vm10, %v408_v40, %v405_v26  ;;  %v423_v56 = vmul.f32 0.6931472, %v713_v0 }
  0x88   :  { %528 = vst [vmem:[#allocation5 + $0xc8] sm:$0xff] %v577_v50  ;;  %v579_v45 = vadd.f32 -0.6931472, %v466_v10  ;;  %v467_v33 = vsel %vm83_vm5, %v1172_v9, %v411_v57  ;;  %v420_v63 = vsel %vm1260_vm11, %v417_v37, %v414_v54  ;;  %v715_v51 = vpop.eup %714 }
  0x89   :  { %529 = vst [vmem:[#allocation5 + $0xd0] sm:$0xff] %v578_v53  ;;  %v580_v21 = vadd.f32 -0.6931472, %v467_v33  ;;  %v468_v58 = vsel %vm84_vm9, %v1180_v19, %v420_v63  ;;  %v429_v9 = vsel %vm428_vm13, %v426_v47, %v423_v56  ;;  %v432_v61 = vmul.f32 0.6931472, %v715_v51 }
  0x8a   :  { %530 = vst [vmem:[#allocation5 + $0xd8] sm:$0xff] %v579_v45  ;;  %v581_v49 = vadd.f32 -0.6931472, %v468_v58  ;;  %v469_v4 = vsel %vm85_vm12, %v1187_v6, %v429_v9 }
  0x8b   :  { %531 = vst [vmem:[#allocation5 + $0xe0] sm:$0xff] %v580_v21  ;;  %v582_v5 = vadd.f32 -0.6931472, %v469_v4  ;;  %v438_v59 = vsel %vm437_vm14, %v435_v11, %v432_v61 }
  0x8c   :  { %532 = vst [vmem:[#allocation5 + $0xe8] sm:$0xff] %v581_v49  ;;  %v470_v46 = vsel %vm86_vm15, %v1191_v30, %v438_v59 }
  0x8d   :  { %533 = vst [vmem:[#allocation5 + $0xf0] sm:$0xff] %v582_v5  ;;  %v583_v1 = vadd.f32 -0.6931472, %v470_v46 }
  0x8f   :  { %534 = vst [vmem:[#allocation5 + $0xf8] sm:$0xff] %v583_v1 }
  0x90   :  { %749 = shalt.err (!%p746_p12)
}
  0x91   :  { %s750_s24 = scalar_lea.hbm %s1300_s1, 4096 }
  0x92   :  { %p751_p13 = scmp.ne.s32.totalorder %s1300_s1, %s750_s24  ;;  %p754_p0 = scmp.lt.u32.totalorder %s750_s24, %s1300_s1 }
  0x94   :  { %p756_p1 = pnand %p754_p0, %p751_p13 }
  0x96   :  { %759 = shalt.err (!%p756_p1)
}
  0x97   :  { %546 = dma.vmem_to_hbm [thread:$0]  %s541_s20, 4096, %s1300_s1, [#allocation4], %s765_s16, %s765_s16, %s766_s17  }
  0x98   :  { %762 = dma.done.wait [#allocation4], 4096  }
  0x99   :  { %763 = vsyncadd [#allocation4], 4294963200 }
  0x9a   :  { %550 = vsyncpa [#allocation3], 1 }
  0x9b   :  { %551 = vsyncpa [#allocation4], 1 }

</bundles_post_ra>
